<compile_context>
chip_gen: v7x
topology: tpu7x:2x2x1
jax: 0.10.0
libtpu: 0.0.40
codegen_flags: <defaults>
</compile_context>

<pallas_src>
import functools

import jax
import jax.numpy as jnp
from jax import lax
from jax.experimental import pallas as pl
from jax.experimental.pallas import tpu as pltpu


# Target ~1 MiB of in+out HBM traffic per grid step (mem-bound regime; tile
# sweeps show ~0.5-1 MiB/step reaches ~85%+ of HBM roofline).
_STEP_TRAFFIC_BUDGET_BYTES = 1 << 20


def _round_up(a: int, b: int) -> int:
    return ((a + b - 1) // b) * b


def _pick_batch_tile(B: int, n_pixel_tiles: int, per_image_step_bytes: int) -> int:
    """Largest divisor of B within the per-step traffic budget, keeping >=2 grid steps."""
    divisors = [d for d in range(1, B + 1) if B % d == 0]
    fitting = [d for d in divisors if d * per_image_step_bytes <= _STEP_TRAFFIC_BUDGET_BYTES]
    bt = max(fitting) if fitting else 1
    # Keep at least 2 grid steps when the problem offers them so a v7x megacore
    # can split the (batch-tile, pixel-tile) grid across both TensorCores.
    # (Irrelevant on v5e/v6e, which have a single TensorCore.)
    while bt > 1 and (B // bt) * n_pixel_tiles < 2:
        bt = max(d for d in divisors if d < bt)
    return bt


def _squeeze_kernel(x_ref, w_ref, b_ref, o_ref):
    # x_ref: (Bt, Cin, TP)   -- channels on sublanes, pixel tile on lanes
    # w_ref: (Cout, Cin)
    # b_ref: (Cout, 1)
    # o_ref: (Bt, Cout, TP)
    w = w_ref[...]
    b = b_ref[...]
    # Bt is a small static number; a fully unrolled loop keeps every image's
    # matmul + bias + relu visible to the scheduler within one grid step.
    for i in range(x_ref.shape[0]):
        acc = jnp.dot(w, x_ref[i],
                      preferred_element_type=jnp.float32,
                      precision=lax.Precision.HIGHEST)        # (Cout, TP), f32
        o_ref[i] = jnp.maximum(acc + b, 0.0).astype(o_ref.dtype)


@functools.partial(jax.jit, static_argnames=("tile_p",))
def squeeze_block_forward(x_nchw, weight, bias, *, tile_p=32768):
    """Forward of squeeze_block: ReLU(Conv2d(kernel_size=1)(x)).

    x_nchw : (B, Cin, H, W) float32
    weight : (Cout, Cin, 1, 1)  (PyTorch Conv2d layout)
    bias   : (Cout,)
    returns: (B, Cout, H, W)
    """
    B, Cin, H, W = x_nchw.shape
    Cout = weight.shape[0]
    HW = H * W

    # Pixel tile (lane axis).  If HW fits under the cap, use the full pixel
    # extent as the block (equal-to-full-dim is always layout-legal, no ragged
    # tiles, no padding anywhere).  Otherwise tile by a multiple of 128; the
    # last tile may be ragged and Pallas masks its stores.
    cap = max(128, _round_up(tile_p, 128))
    tp = HW if HW <= cap else cap
    n_p = -(-HW // tp)

    per_image_step_bytes = (Cin + Cout) * tp * x_nchw.dtype.itemsize
    bt = _pick_batch_tile(B, n_p, per_image_step_bytes)

    # Pure reshapes only (no transposes, no extra HBM passes).
    x_bkm = x_nchw.reshape(B, Cin, HW)    # (B, Cin, HW)
    w_nk = weight.reshape(Cout, Cin)      # (Cout, Cin)
    b_n1 = bias.reshape(Cout, 1)          # broadcasts over the pixel (lane) axis

    out = pl.pallas_call(
        _squeeze_kernel,
        out_shape=jax.ShapeDtypeStruct((B, Cout, HW), x_nchw.dtype),
        grid_spec=pltpu.PrefetchScalarGridSpec(
            num_scalar_prefetch=0,
            grid=(B // bt, n_p),
            in_specs=[
                pl.BlockSpec((bt, Cin, tp), lambda b, p: (b, 0, p)),
                pl.BlockSpec((Cout, Cin), lambda b, p: (0, 0)),
                pl.BlockSpec((Cout, 1), lambda b, p: (0, 0)),
            ],
            out_specs=pl.BlockSpec((bt, Cout, tp), lambda b, p: (b, 0, p)),
        ),
        # Double-buffered per-step VMEM ~= 2*bt*(pad8(Cin)+pad8(Cout))*tp*4 B,
        # bounded to a few MiB by the ~1 MiB/step traffic budget -> fits the
        # scoped VMEM defaults on v5e (16 MiB) / v6e (32 MiB) / v7x (32 of
        # 64 MiB) with no vmem_limit_bytes override.  Both grid axes are
        # independent => "parallel" lets a v7x megacore shard (batch-tile,
        # pixel-tile) steps across its two TensorCores.
        compiler_params=pltpu.CompilerParams(
            dimension_semantics=("parallel", "parallel")),
    )(x_bkm, w_nk, b_n1)

    # Pure reshape back to NCHW -- no slicing needed.
    return out.reshape(B, Cout, H, W)


def _reference(x, weight, bias):
    Cout, Cin = weight.shape[0], weight.shape[1]
    y = jnp.einsum("bchw,oc->bohw", x, weight.reshape(Cout, Cin),
                   precision=lax.Precision.HIGHEST) + bias.reshape(1, Cout, 1, 1)
    return jnp.maximum(y, 0.0)


if __name__ == "__main__":
    key = jax.random.PRNGKey(0)

    # Case 1: the module's small demo shapes (batch=2, input_channel=4,
    #         squeeze_channel=8, spatial 16x16).
    # Case 2: a slightly larger batch that exercises the batch-folding path
    #         (Bt > 1 images folded into one grid step).
    cases = [
        (2, 4, 8, 16, 16),
        (8, 4, 8, 32, 32),
    ]

    for (B, Cin, Cout, H, W) in cases:
        key, kx, kw, kb = jax.random.split(key, 4)
        x = jax.random.normal(kx, (B, Cin, H, W), dtype=jnp.float32)
        weight = jax.random.normal(kw, (Cout, Cin, 1, 1), dtype=jnp.float32) * 0.1
        bias = jax.random.normal(kb, (Cout,), dtype=jnp.float32) * 0.1

        y = jax.block_until_ready(squeeze_block_forward(x, weight, bias))
        ref = _reference(x, weight, bias)

        assert y.shape == (B, Cout, H, W)
        assert jnp.allclose(y, ref, atol=1e-5, rtol=1e-5), \
            (B, Cin, Cout, H, W, float(jnp.max(jnp.abs(y - ref))))

    print("KERNEL_OK")
</pallas_src>

<mosaic_0001>
module attributes {stable_mosaic.version = 11 : i64} {
  func.func @_squeeze_kernel(%arg0: i32, %arg1: i32, %arg2: memref<1x4x256xf32, #tpu.memory_space<vmem>>, %arg3: memref<8x4xf32, #tpu.memory_space<vmem>>, %arg4: memref<8x1xf32, #tpu.memory_space<vmem>>, %arg5: memref<1x8x256xf32, #tpu.memory_space<vmem>>) attributes {dimension_semantics = [#tpu.dimension_semantics<parallel>, #tpu.dimension_semantics<parallel>], iteration_bounds = array<i64: 2, 1>, scalar_prefetch = 0 : i64, scratch_operands = 0 : i64, tpu.core_type = #tpu.core_type<tc>, window_params = [{transform_indices = @transform_0, window_bounds = array<i64: 1, 4, 256>}, {pipeline_mode = #tpu.pipeline_mode<synchronous>, transform_indices = @transform_1, window_bounds = array<i64: 8, 4>}, {pipeline_mode = #tpu.pipeline_mode<synchronous>, transform_indices = @transform_2, window_bounds = array<i64: 8, 1>}, {transform_indices = @transform_3, window_bounds = array<i64: 1, 8, 256>}]} {
    %c0 = arith.constant 0 : index
    %c0_0 = arith.constant 0 : index
    %0 = vector.load %arg3[%c0, %c0_0] : memref<8x4xf32, #tpu.memory_space<vmem>>, vector<8x4xf32>
    %c0_1 = arith.constant 0 : index
    %c0_2 = arith.constant 0 : index
    %1 = vector.load %arg4[%c0_1, %c0_2] : memref<8x1xf32, #tpu.memory_space<vmem>>, vector<8x1xf32>
    %c0_3 = arith.constant 0 : index
    %c0_4 = arith.constant 0 : index
    %c0_5 = arith.constant 0 : index
    %2 = vector.load %arg2[%c0_3, %c0_4, %c0_5] : memref<1x4x256xf32, #tpu.memory_space<vmem>>, vector<1x4x256xf32>
    %3 = vector.shape_cast %2 : vector<1x4x256xf32> to vector<4x256xf32>
    %cst = arith.constant dense<0.000000e+00> : vector<8x256xf32>
    %4 = tpu.matmul %0, %3, %cst {dimension_numbers = #tpu.dot_dimension_numbers<[1], [0], [0], [1], [0, 0, 1, 1], [], []>, precision = #tpu.contract_precision<fp32>} : vector<8x4xf32>, vector<4x256xf32>, vector<8x256xf32> -> vector<8x256xf32>
    %5 = vector.broadcast %1 : vector<8x1xf32> to vector<8x256xf32>
    %6 = arith.addf %4, %5 : vector<8x256xf32>
    %cst_6 = arith.constant 0.000000e+00 : f32
    %7 = vector.broadcast %cst_6 : f32 to vector<8x256xf32>
    %8 = arith.maximumf %6, %7 : vector<8x256xf32>
    %c0_7 = arith.constant 0 : index
    %c0_8 = arith.constant 0 : index
    %c0_9 = arith.constant 0 : index
    %9 = vector.load %arg5[%c0_7, %c0_8, %c0_9] : memref<1x8x256xf32, #tpu.memory_space<vmem>>, vector<1x8x256xf32>
    %10 = vector.shape_cast %9 : vector<1x8x256xf32> to vector<8x256xf32>
    %11 = vector.shape_cast %8 : vector<8x256xf32> to vector<1x8x256xf32>
    tpu.vector_store %arg5[%c0_7, %c0_8, %c0_9], %11 {strides = array<i32>} : memref<1x8x256xf32, #tpu.memory_space<vmem>>, vector<1x8x256xf32>,
    return
  }
  func.func @transform_0(%arg0: i32, %arg1: i32) -> (i32, i32, i32) {
    %c0_i32 = arith.constant 0 : i32
    %c0_i32_0 = arith.constant 0 : i32
    return %arg0, %c0_i32, %arg1 : i32, i32, i32
  }
  func.func @transform_1(%arg0: i32, %arg1: i32) -> (i32, i32) {
    %c0_i32 = arith.constant 0 : i32
    %c0_i32_0 = arith.constant 0 : i32
    %c0_i32_1 = arith.constant 0 : i32
    return %c0_i32, %c0_i32_0 : i32, i32
  }
  func.func @transform_2(%arg0: i32, %arg1: i32) -> (i32, i32) {
    %c0_i32 = arith.constant 0 : i32
    %c0_i32_0 = arith.constant 0 : i32
    %c0_i32_1 = arith.constant 0 : i32
    return %c0_i32, %c0_i32_0 : i32, i32
  }
  func.func @transform_3(%arg0: i32, %arg1: i32) -> (i32, i32, i32) {
    %c0_i32 = arith.constant 0 : i32
    %c0_i32_0 = arith.constant 0 : i32
    return %arg0, %c0_i32, %arg1 : i32, i32, i32
  }
}

</mosaic_0001>

<bundles_post_ra>
// kernel: squeeze_block_forward.1
= control target key start
LH: loop header
LB: loop body
LE: loop exit
PB: predicated region body
PF: predicated region fallthrough
CT: control target
= control target key end

     0   :  { %s884_s12 = smov 0   ;;  %s886_s13 = smov 0   ;;  %s927_s0 = inlined_call_operand.vmem [shape: f32[2,4,256], index: 0, kind: input, shape index: {}]   ;;  %s928_s1 = inlined_call_operand.vmem [shape: f32[8,4], index: 1, kind: input, shape index: {}]   ;;  %s929_s2 = inlined_call_operand.vmem [shape: f32[8,1], index: 2, kind: input, shape index: {}]   ;;  %s930_s3 = inlined_call_operand.vmem [shape: f32[2,8,256], index: 3, kind: output, shape index: {}]  }
   0x1   :  { %s888_s14 = smov 0  }
   0x2 LB: > { %s25_s15 = sadd.s32 1, %s856_s13  ;;  %p789_p0 = scmp.ge.s32.totalorder %s860_s14, 1  ;;  %s860_s14 = sphi %s888_s14, %s13_s14   ;;  %s856_s13 = sphi %s886_s13, %s932_s13   ;;  %s852_s12 = sphi %s884_s12, %s931_s12  }
   0x3   : > { %p27_p1 = scmp.ge.s32.totalorder %s25_s15, 2  ;;  %p158_p2 = scmp.lt.s32.totalorder %s860_s14, 3 }
   0x5   : > { %s934_s15 = smov (%p27_p1, %s25_s15), 0  ;;  %p159_p3 = pnand %p789_p0, %p158_p2 }
   0x6   : > { %p191_p4 = scmp.lt.s32.totalorder (!%p159_p3), %s852_s12, 1  ;;  %v210_v0 = vld [vmem:[%s928_s1] sm:$0xff] (!%p159_p3)  ;;  %vm220_vm0 = vcmask (!%p159_p3), 31744   ;;  %v862_v1 = vmov (!%p159_p3), 0.0   ;;  %v863_v5 = vmov (!%p159_p3), 0   ;;  %vm224_vm1 = vcmask (!%p159_p3), 1043456  }
   0x7   : > { %162 = sbr.rel (%p159_p3) target bundleno = 261 (0x105), region = 32  ;;  %295 = vmatprep.mubr.f32.mxu1 (!%p159_p3), %v862_v1  ;;  %532 = vmatprep.mubr.f32.mxu0 (!%p159_p3), %v862_v1  ;;  %v222_v2 = vsel (!%p159_p3), %vm220_vm0, %v210_v0, 0  ;;  %v211_v3 = vld [vmem:[%s929_s2] sm:$0xff] (!%p159_p3) }
   0x8   : > { %v296_v4 = vand.u32 (!%p159_p3), 4294901760, %v222_v2  ;;  %836 = vset.pattern.permute.xlu0 (!%p159_p3), %v863_v5 }
   0x9   : > { %215 = vperm.xlu0 (!%p159_p3), %836, %v211_v3  }
   0xa   : > { %v297_v6 = vsub.f32 (!%p159_p3), %v222_v2, %v296_v4 }
   0xc   : > { %v298_v8 = vand.u32 (!%p159_p3), 4294901760, %v297_v6 }
   0xe   : > { %s936_s12 = smov (!%p191_p4, %s852_s12), 1  ;;  %v299_v12 = vsub.f32 %v297_v6, %v298_v8 }
   0xf   : > { %s796_s20 = sshll.u32 %s936_s12, 3  ;;  %s797_s24 = sshll.u32 %s936_s12, 4 }
  0x10   : > { %s198_s23 = scalar_lea.vmem %s927_s0, %s796_s20  ;;  %v300_v16 = vand.u32 4294901760, %v299_v12  ;;  %s208_s27 = scalar_lea.vmem %s930_s3, %s797_s24 }
  0x11   : > { %v212_v7 = vld [vmem:[%s198_s23] sm:$0xff] }
  0x12   : > { %v219_v9 = vcombine.high %v212_v7, %v212_v7  ;;  %v225_v10 = vsel %vm224_vm1, %v212_v7, 0 }
  0x13   : > { %v231_v11 = vand.u32 4294901760, %v225_v10 }
  0x14   : > { %v227_v13 = vsel %vm224_vm1, %v219_v9, 0 }
  0x15   : > { %v229_v14 = vand.u32 4294901760, %v227_v13  ;;  %v314_v15 = vsub.f32 %v225_v10, %v231_v11 }
  0x17   : > { %230 = vmatprep.subr.mxu1 %v229_v14  ;;  %467 = vmatprep.subr.mxu0 %v229_v14  ;;  %v308_v17 = vsub.f32 %v227_v13, %v229_v14  ;;  %v315_v18 = vand.u32 4294901760, %v314_v15 }
  0x18   : > { %232 = vmatpush1.msra.mxu1 %v231_v11  ;;  %469 = vmatpush1.msra.mxu0 %v231_v11 }
  0x19   : > { %301 = vmatmul.mubr.f32.vlgmr.msra.gmra.mrb[0].mxu1 %v300_v16  ;;  %536 = vmatmul.mubr.f32.vlgmr.msra.gmra.mrb[0].mxu0 %v298_v8  ;;  %v309_v19 = vand.u32 4294901760, %v308_v17  ;;  %v316_v20 = vsub.f32 %v314_v15, %v315_v18 }
  0x1a   : > { %381 = vmatprep.mubr.f32.mxu1 %v862_v1  ;;  %612 = vmatprep.mubr.f32.mxu0 %v862_v1 }
  0x1b   : > { %v310_v21 = vsub.f32 %v308_v17, %v309_v19  ;;  %545 = vmatprep.subr.mxu0 %v309_v19  ;;  %v317_v22 = vand.u32 4294901760, %v316_v20 }
  0x1c   : > { %549 = vmatpush1.msra.mxu0 %v315_v18 }
  0x1d   : > { %v311_v23 = vand.u32 4294901760, %v310_v21  ;;  %621 = vmatprep.subr.mxu0 %v229_v14 }
  0x1f   : > { %312 = vmatprep.subr.mxu1 %v311_v23 }
  0x20   : > { %318 = vmatpush1.msra.mxu1 %v317_v22 }
  0x21   : > { %383 = vmatmul.mubr.f32.vlgmr.msra.gmra.mrb[0].mxu1 %v296_v4  ;;  %614 = vmatmul.mubr.f32.vlgmr.msra.gmra.mrb[0].mxu0 %v296_v4 }
  0x22   : > { %391 = vmatprep.subr.mxu1 %v308_v17  ;;  %457 = vmatprep.mubr.f32.mxu1 %v862_v1 }
  0x23   : > { %394 = vmatpush1.msra.mxu1 %v314_v15  ;;  %623 = vmatpush1.msra.mxu0 %v231_v11 }
  0x24   : > { %686 = vmatprep.mubr.f32.mxu0 %v862_v1 }
  0x29   : > { %460 = vmatmul.mubr.f32.vlgmr.msra.gmra.mrb[0].mxu1 %v297_v6  ;;  %688 = vmatmul.mubr.f32.vlgmr.msra.gmra.mrb[0].mxu0 %v296_v4 }
  0x88   : > { %v216_v24 = vpop.permute.xlu0 %215 }
  0xfc   : > { %v461_v25 = vpop.f32.mrb[0].mxu1  ;;  %v689_v26 = vpop.f32.mrb[0].mxu0 }
  0xfd   : > { %v798_v27 = vadd.f32 %v461_v25, %v216_v24  ;;  %v463_v28 = vpop.f32.mrb[1].mxu1  ;;  %v691_v29 = vpop.f32.mrb[1].mxu0 }
  0xfe   : > { %v800_v30 = vadd.f32 %v463_v28, %v216_v24 }
  0xff   : > { %v799_v31 = vadd.f32 %v798_v27, %v689_v26 }
 0x100   : > { %v801_v32 = vadd.f32 %v800_v30, %v691_v29 }
 0x101   : > { %v694_v33 = vmax.f32 %v799_v31, 0.0 }
 0x102   : > { %v695_v34 = vmax.f32 %v801_v32, 0.0 }
 0x103   : > { %696 = vst [vmem:[%s208_s27] sm:$0xff] %v694_v33 }
 0x104   : > { %697 = vst [vmem:[%s208_s27 + $0x8] sm:$0xff] %v695_v34 }
 0x105 PF: > { %s13_s14 = sadd.s32 1, %s860_s14   ;;  %s931_s12 = smov %s856_s13 }
 0x106   : > { %p10_p5 = scmp.ge.s32.totalorder %s13_s14, 4   ;;  %s932_s13 = smov %s934_s15 }
 0x108   :  { %12 = sbr.rel (!%p10_p5) target bundleno = 2 (0x2), region = 62 }

</bundles_post_ra>
